<compile_context>
chip_gen: v7x
topology: tpu7x:2x2x1
jax: 0.10.0
libtpu: 0.0.40
codegen_flags: <defaults>
</compile_context>

<pallas_src>
import functools

import jax
import jax.numpy as jnp
from jax.experimental import pallas as pl
from jax.experimental.pallas import tpu as pltpu

_EPS = 1e-12          # matches F.normalize eps
_NEG_BIG = -1e30      # finite "-inf": exp() underflows to 0, no (-inf)-(-inf) NaNs
_DEF_TEMPERATURE = 0.07


def _round_up(x, m):
    return ((x + m - 1) // m) * m


def _default_block_q():
    # 256 matches the 2x256x256 MXU on v6e / v7x; <= v5 (128-wide MXU) prefers 128.
    try:
        kind = jax.devices()[0].device_kind.lower()
        if any(t in kind for t in ("v2", "v3", "v4", "v5")):
            return 128
    except Exception:
        pass
    return 256


# ---------------------------------------------------------------------------
# mask=None branch:  z_p (B, N), z_c (B, N) -> scalar loss
# ---------------------------------------------------------------------------
def _infonce_kernel(zp_ref, zct_ref, invp_ref, invc_ref, out_ref,
                    m_sc, l_sc, d_sc, *, inv_temp, b_valid, mask_cols):
    i = pl.program_id(0)          # row tile     ("parallel")
    j = pl.program_id(1)          # column tile  ("arbitrary" reduction, innermost)
    tq = zp_ref.shape[0]
    tc = zct_ref.shape[1]

    # Reset the online-LSE state at the first column tile of every row tile.
    @pl.when(j == 0)
    def _init():
        m_sc[...] = jnp.full_like(m_sc, _NEG_BIG)
        l_sc[...] = jnp.zeros_like(l_sc)
        d_sc[...] = jnp.zeros_like(d_sc)

    # Plain NN matmul (z_c pre-transposed once in the wrapper); normalization applied
    # post-matmul from the precomputed inverse norms, so raw (possibly bf16) data feeds MXU.
    raw = jnp.dot(zp_ref[...], zct_ref[...], preferred_element_type=jnp.float32)   # (tq, tc)
    c_sim = raw * (invp_ref[...] * inv_temp) * invc_ref[...]                        # (tq, tc)

    rows = jax.lax.broadcasted_iota(jnp.int32, c_sim.shape, 0) + i * tq
    cols = jax.lax.broadcasted_iota(jnp.int32, c_sim.shape, 1) + j * tc
    diag = cols == rows

    # Positive (diagonal) similarity; exactly one column tile per row contributes.
    d_sc[...] += jnp.sum(jnp.where(diag, c_sim, 0.0), axis=-1, keepdims=True)

    # Negatives only: diagonal (and zero-padded columns) pushed to -BIG *before* max/exp,
    # eliminating the e_sum - e_diag cancellation of the previous version.
    invalid = diag
    if mask_cols:
        invalid = invalid | (cols >= b_valid)
    c_neg = jnp.where(invalid, _NEG_BIG, c_sim)

    m_new = jnp.maximum(m_sc[...], jnp.max(c_neg, axis=-1, keepdims=True))
    l_sc[...] = (l_sc[...] * jnp.exp(m_sc[...] - m_new)
                 + jnp.sum(jnp.exp(c_neg - m_new), axis=-1, keepdims=True))
    m_sc[...] = m_new

    @pl.when(j == pl.num_programs(1) - 1)
    def _finalize():
        # loss_i = log(sum_{j != i} exp(c_ij)) - c_ii
        # NOTE: B == 1 (no negatives) is degenerate, same hazard as the PyTorch module.
        out_ref[...] = m_sc[...] + jnp.log(l_sc[...]) - d_sc[...]


def cross_modal_infonce(z_p, z_c, temperature=_DEF_TEMPERATURE, *,
                        block_q=None, block_c=256, mxu_dtype=None):
    """mask=None branch of CrossModalInfoNCE.forward. z_p, z_c: (B, N) -> scalar."""
    B, N = z_p.shape
    assert z_c.shape == (B, N), (z_p.shape, z_c.shape)

    block_q = _default_block_q() if block_q is None else block_q
    block_q = max(8, _round_up(block_q, 8))
    block_c = max(128, _round_up(block_c, 128))

    # Inverse L2 norms, computed once in f32 from the raw inputs (hoisted out of the kernel).
    zp32 = z_p.astype(jnp.float32)
    zc32 = z_c.astype(jnp.float32)
    inv_p = jax.lax.rsqrt(
        jnp.maximum(jnp.sum(zp32 * zp32, axis=-1, keepdims=True), _EPS * _EPS))   # (B, 1)
    inv_c = jax.lax.rsqrt(
        jnp.maximum(jnp.sum(zc32 * zc32, axis=-1), _EPS * _EPS)).reshape(1, B)    # (1, B)

    # One-time transpose so the kernel runs a plain NN contraction (no per-step vxpose).
    zct = jnp.swapaxes(z_c, 0, 1)                                                  # (N, B)
    if mxu_dtype is not None:
        z_p = z_p.astype(mxu_dtype)
        zct = zct.astype(mxu_dtype)

    # Row / column tiling with zero padding of the ragged last tiles.
    if B <= block_q:
        tq = _round_up(B, 8)
        bq = tq
    else:
        tq = block_q
        bq = _round_up(B, tq)
    if B <= block_c:
        tc, bc = B, B
    else:
        tc = block_c
        bc = _round_up(B, tc)

    zp_pad = jnp.pad(z_p, ((0, bq - B), (0, 0)))
    zct_pad = jnp.pad(zct, ((0, 0), (0, bc - B)))
    invp_pad = jnp.pad(inv_p, ((0, bq - B), (0, 0)))
    invc_pad = jnp.pad(inv_c, ((0, 0), (0, bc - B)))

    itemsize = jnp.dtype(zp_pad.dtype).itemsize
    vmem_est = (2 * (tq * N + N * tc) * itemsize          # double-buffered MXU operand tiles
                + 2 * (tq * 128 + 8 * tc + tq * 128) * 4  # inv_p / inv_c / out blocks (lane-padded)
                + 3 * tq * 128 * 4                        # online-LSE scratch
                + 8 * tq * max(tc, 128) * 4)              # c_sim-sized temporaries (generous)
    vmem_limit = int(min(max(vmem_est * 3 // 2, 32 * 1024 * 1024), 64 * 1024 * 1024))

    kernel = functools.partial(_infonce_kernel, inv_temp=1.0 / float(temperature),
                               b_valid=B, mask_cols=(bc != B))
    per_row = pl.pallas_call(
        kernel,
        out_shape=jax.ShapeDtypeStruct((bq, 1), jnp.float32),
        grid_spec=pltpu.PrefetchScalarGridSpec(
            num_scalar_prefetch=0,
            grid=(bq // tq, bc // tc),                        # reduction (columns) innermost
            in_specs=[
                pl.BlockSpec((tq, N), lambda i, j: (i, 0)),   # z_p row tile (fetched once per i)
                pl.BlockSpec((N, tc), lambda i, j: (0, j)),   # z_c^T column tile (pipelined)
                pl.BlockSpec((tq, 1), lambda i, j: (i, 0)),   # 1 / ||z_p||
                pl.BlockSpec((1, tc), lambda i, j: (0, j)),   # 1 / ||z_c||
            ],
            out_specs=pl.BlockSpec((tq, 1), lambda i, j: (i, 0)),
            scratch_shapes=[pltpu.VMEM((tq, 1), jnp.float32)] * 3,   # m, l, c_diag
        ),
        compiler_params=pltpu.CompilerParams(
            dimension_semantics=("parallel", "arbitrary"),
            vmem_limit_bytes=vmem_limit),
    )(zp_pad, zct_pad, invp_pad, invc_pad)

    # Tiny trailing reduction over the per-row losses (padded rows sliced away).
    return jnp.mean(per_row[:B, 0])


# ---------------------------------------------------------------------------
# mask != None branch:  z_p (B, N), z_c (B, K, N), mask (B, K) -> scalar loss
# ---------------------------------------------------------------------------
def _masked_infonce_kernel(zp_ref, zct_ref, invp_ref, invc_ref, valid_ref, out_ref,
                           *, inv_temp, tokens):
    i = pl.program_id(0)
    tq = zp_ref.shape[0]

    raw = jnp.dot(zp_ref[...], zct_ref[...], preferred_element_type=jnp.float32)   # (tq, B*K)
    c_sim = raw * (invp_ref[...] * inv_temp) * invc_ref[...]
    valid = valid_ref[...]                                                          # (tq, B*K)

    rows = jax.lax.broadcasted_iota(jnp.int32, c_sim.shape, 0) + i * tq
    cols = jax.lax.broadcasted_iota(jnp.int32, c_sim.shape, 1)
    lo = rows * tokens
    pos_blk = (cols >= lo) & (cols < lo + tokens)          # columns of the m == b block

    # Negatives: valid tokens of other batch elements. Max-subtracted LSE; the PyTorch
    # module exponentiates unguarded — this computes the same value without f32 overflow.
    neg_ok = jnp.logical_and(valid > 0.0, jnp.logical_not(pos_blk))
    c_neg = jnp.where(neg_ok, c_sim, _NEG_BIG)
    row_max = jnp.max(c_neg, axis=-1, keepdims=True)
    log_lneg = row_max + jnp.log(
        jnp.sum(jnp.exp(c_neg - row_max), axis=-1, keepdims=True))                  # (tq, 1)

    # -log(exp(c)/l_neg) * positive * valid  ==  (log l_neg - c) on the valid positive block.
    pos_val = jnp.where(pos_blk, (log_lneg - c_sim) * valid, 0.0)
    pos_sum = jnp.sum(pos_val, axis=-1, keepdims=True)
    pos_cnt = jnp.sum(jnp.where(pos_val != 0.0, 1.0, 0.0), axis=-1, keepdims=True)
    # __nonzero_mean: per-row mean over nonzero entries, 0 if none.
    out_ref[...] = jnp.where(pos_cnt > 0.0, pos_sum / jnp.maximum(pos_cnt, 1.0), 0.0)


def cross_modal_infonce_masked(z_p, z_c, mask, temperature=_DEF_TEMPERATURE, *,
                               block_q=None, mxu_dtype=None):
    """mask!=None branch: z_p (B, N), z_c (B, K, N), mask (B, K) -> scalar."""
    B, K, N = z_c.shape
    assert z_p.shape == (B, N) and mask.shape == (B, K)

    block_q = _default_block_q() if block_q is None else block_q
    block_q = max(8, _round_up(block_q, 8))
    bk = B * K

    zc_flat = z_c.reshape(bk, N)
    zp32 = z_p.astype(jnp.float32)
    zc32 = zc_flat.astype(jnp.float32)
    inv_p = jax.lax.rsqrt(
        jnp.maximum(jnp.sum(zp32 * zp32, axis=-1, keepdims=True), _EPS * _EPS))    # (B, 1)
    inv_c = jax.lax.rsqrt(
        jnp.maximum(jnp.sum(zc32 * zc32, axis=-1), _EPS * _EPS)).reshape(1, bk)    # (1, B*K)

    zct = jnp.swapaxes(zc_flat, 0, 1)                                               # (N, B*K)
    if mxu_dtype is not None:
        z_p = z_p.astype(mxu_dtype)
        zct = zct.astype(mxu_dtype)

    # valid[b, m*K + k] = mask[b, k]  (matches torch's mask.unsqueeze(1).repeat(1, B, 1)).
    valid = jnp.tile(mask.astype(jnp.float32), (1, B))                               # (B, B*K)

    if B <= block_q:
        tq = _round_up(B, 8)
        bq = tq
    else:
        tq = block_q
        bq = _round_up(B, tq)
    zp_pad = jnp.pad(z_p, ((0, bq - B), (0, 0)))
    invp_pad = jnp.pad(inv_p, ((0, bq - B), (0, 0)))
    valid_pad = jnp.pad(valid, ((0, bq - B), (0, 0)))

    itemsize = jnp.dtype(zp_pad.dtype).itemsize
    vmem_est = (2 * N * bk * itemsize                     # resident z_c^T (default 2 buffers)
                + 2 * tq * N * itemsize                   # z_p row tile
                + 2 * tq * bk * 4                         # valid row tile
                + 2 * (tq * 128 + 8 * bk + tq * 128) * 4  # inv_p / inv_c / out blocks
                + 8 * tq * max(bk, 128) * 4)              # c_sim-sized temporaries
    vmem_limit = int(min(max(vmem_est * 3 // 2, 32 * 1024 * 1024), 64 * 1024 * 1024))

    kernel = functools.partial(_masked_infonce_kernel,
                               inv_temp=1.0 / float(temperature), tokens=K)
    per_row = pl.pallas_call(
        kernel,
        out_shape=jax.ShapeDtypeStruct((bq, 1), jnp.float32),
        grid_spec=pltpu.PrefetchScalarGridSpec(
            num_scalar_prefetch=0,
            grid=(bq // tq,),
            in_specs=[
                pl.BlockSpec((tq, N), lambda i: (i, 0)),      # z_p row tile
                pl.BlockSpec((N, bk), lambda i: (0, 0)),      # z_c_flat^T resident (fetched once)
                pl.BlockSpec((tq, 1), lambda i: (i, 0)),      # 1 / ||z_p||
                pl.BlockSpec((1, bk), lambda i: (0, 0)),      # 1 / ||z_c||
                pl.BlockSpec((tq, bk), lambda i: (i, 0)),     # valid-token mask, row tile
            ],
            out_specs=pl.BlockSpec((tq, 1), lambda i: (i, 0)),
        ),
        compiler_params=pltpu.CompilerParams(
            dimension_semantics=("parallel",),
            vmem_limit_bytes=vmem_limit),
    )(zp_pad, zct, invp_pad, inv_c, valid_pad)

    return jnp.mean(per_row[:B, 0])


def cross_modal_infonce_forward(z_p, z_c, mask=None, temperature=_DEF_TEMPERATURE):
    """Mirror of CrossModalInfoNCE.forward."""
    if mask is None:
        return cross_modal_infonce(z_p, z_c, temperature)
    return cross_modal_infonce_masked(z_p, z_c, mask, temperature)


# ---------------------------------------------------------------------------
# Pure-JAX references mirroring the PyTorch module (for sanity checks).
# ---------------------------------------------------------------------------
def _reference_unmasked(z_p, z_c, temperature=_DEF_TEMPERATURE):
    B = z_p.shape[0]
    zp = z_p / jnp.maximum(jnp.linalg.norm(z_p, axis=-1, keepdims=True), _EPS)
    zc = z_c / jnp.maximum(jnp.linalg.norm(z_c, axis=-1, keepdims=True), _EPS)
    pos = jnp.eye(B, dtype=jnp.float32)
    neg = 1.0 - pos
    c_sim = jnp.dot(zp, zc.T, precision=jax.lax.Precision.HIGHEST) / temperature
    exp_sim = jnp.exp(c_sim)
    l_neg = jnp.sum(exp_sim * neg, axis=1, keepdims=True)
    l_bp = -jnp.log(exp_sim / l_neg) * pos
    nz_sum = jnp.sum(l_bp, axis=1, keepdims=True)
    nz_cnt = jnp.sum((l_bp != 0.0).astype(jnp.float32), axis=1, keepdims=True)
    loss_bt = jnp.where(nz_cnt > 0.0, nz_sum / jnp.maximum(nz_cnt, 1.0), 0.0)
    return jnp.mean(loss_bt)


def _reference_masked(z_p, z_c, mask, temperature=_DEF_TEMPERATURE):
    B, K, _ = z_c.shape
    zp = z_p / jnp.maximum(jnp.linalg.norm(z_p, axis=-1, keepdims=True), _EPS)
    zc = z_c / jnp.maximum(jnp.linalg.norm(z_c, axis=-1, keepdims=True), _EPS)
    pos = jnp.broadcast_to(jnp.eye(B, dtype=jnp.float32)[:, :, None], (B, B, K))
    neg = 1.0 - pos
    valid = jnp.broadcast_to(mask[:, None, :].astype(jnp.float32), (B, B, K))
    c_sim = jnp.einsum('bn,mkn->bmk', zp, zc,
                       precision=jax.lax.Precision.HIGHEST) / temperature
    exp_sim = jnp.exp(c_sim)
    neg_sim = exp_sim * valid * neg
    l_neg = jnp.sum(neg_sim, axis=(1, 2))
    l_bp = exp_sim / l_neg[:, None, None]
    l_bp = -jnp.log(l_bp) * pos * valid
    nz_sum = jnp.sum(l_bp, axis=(1, 2))
    nz_cnt = jnp.sum((l_bp != 0.0).astype(jnp.float32), axis=(1, 2))
    loss_br = jnp.where(nz_cnt > 0.0, nz_sum / jnp.maximum(nz_cnt, 1.0), 0.0)
    return jnp.mean(loss_br)


if __name__ == "__main__":
    key = jax.random.PRNGKey(0)
    k1, k2, k3, k4, k5, k6 = jax.random.split(key, 6)

    # --- mask=None, multi-tile grid with row AND column padding (B=250 -> padded to 256) ---
    B, N = 250, 128
    z_p = jax.random.normal(k1, (B, N), dtype=jnp.float32)
    z_c = jax.random.normal(k2, (B, N), dtype=jnp.float32)
    loss = jax.block_until_ready(cross_modal_infonce(z_p, z_c, block_q=64, block_c=128))
    ref = _reference_unmasked(z_p, z_c)
    assert jnp.allclose(loss, ref, rtol=1e-3, atol=1e-3), (float(loss), float(ref))

    # --- mask=None, default single-tile path at small B ---
    Bs, Ns = 8, 32
    z_ps = jax.random.normal(k3, (Bs, Ns), dtype=jnp.float32)
    z_cs = jax.random.normal(k4, (Bs, Ns), dtype=jnp.float32)
    loss_s = jax.block_until_ready(cross_modal_infonce_forward(z_ps, z_cs))
    ref_s = _reference_unmasked(z_ps, z_cs)
    assert jnp.allclose(loss_s, ref_s, rtol=1e-3, atol=1e-3), (float(loss_s), float(ref_s))

    # --- mask=None, bf16 MXU feed (normalization stays f32) ---
    loss_bf = jax.block_until_ready(
        cross_modal_infonce(z_p, z_c, block_q=128, block_c=128, mxu_dtype=jnp.bfloat16))
    assert jnp.allclose(loss_bf, ref, rtol=3e-2, atol=3e-2), (float(loss_bf), float(ref))

    # --- mask != None (token-level) branch ---
    K = 16
    z_c3 = jax.random.normal(k5, (Bs, K, Ns), dtype=jnp.float32)
    mask = (jax.random.uniform(k6, (Bs, K)) > 0.3).astype(jnp.float32)
    mask = mask.at[:, 0].set(1.0)   # at least one valid token per batch element
    loss_m = jax.block_until_ready(cross_modal_infonce_forward(z_ps, z_c3, mask))
    ref_m = _reference_masked(z_ps, z_c3, mask)
    assert jnp.allclose(loss_m, ref_m, rtol=1e-3, atol=1e-3), (float(loss_m), float(ref_m))

    print("KERNEL_OK")
</pallas_src>

<mosaic_0001>
module attributes {stable_mosaic.version = 11 : i64} {
  func.func @_infonce_kernel(%arg0: i32, %arg1: i32, %arg2: memref<64x128xf32, #tpu.memory_space<vmem>>, %arg3: memref<128x128xf32, #tpu.memory_space<vmem>>, %arg4: memref<64x1xf32, #tpu.memory_space<vmem>>, %arg5: memref<1x128xf32, #tpu.memory_space<vmem>>, %arg6: memref<64x1xf32, #tpu.memory_space<vmem>>, %arg7: memref<64x1xf32, #tpu.memory_space<vmem>>, %arg8: memref<64x1xf32, #tpu.memory_space<vmem>>, %arg9: memref<64x1xf32, #tpu.memory_space<vmem>>) attributes {dimension_semantics = [#tpu.dimension_semantics<parallel>, #tpu.dimension_semantics<arbitrary>], iteration_bounds = array<i64: 4, 2>, scalar_prefetch = 0 : i64, scratch_operands = 3 : i64, tpu.core_type = #tpu.core_type<tc>, window_params = [{transform_indices = @transform_0, window_bounds = array<i64: 64, 128>}, {transform_indices = @transform_1, window_bounds = array<i64: 128, 128>}, {transform_indices = @transform_2, window_bounds = array<i64: 64, 1>}, {transform_indices = @transform_3, window_bounds = array<i64: 1, 128>}, {transform_indices = @transform_4, window_bounds = array<i64: 64, 1>}]} {
    %c0_i32 = arith.constant 0 : i32
    %0 = arith.cmpi eq, %arg1, %c0_i32 : i32
    %1 = arith.extui %0 : i1 to i32
    %c0_i32_0 = arith.constant 0 : i32
    %2 = arith.cmpi ne, %1, %c0_i32_0 : i32
    scf.if %2 {
      %cst_29 = arith.constant -1.000000e+30 : f32
      %55 = vector.broadcast %cst_29 : f32 to vector<64x1xf32>
      %c0_30 = arith.constant 0 : index
      %c0_31 = arith.constant 0 : index
      %56 = vector.load %arg7[%c0_30, %c0_31] : memref<64x1xf32, #tpu.memory_space<vmem>>, vector<64x1xf32>
      tpu.vector_store %arg7[%c0_30, %c0_31], %55 {strides = array<i32>} : memref<64x1xf32, #tpu.memory_space<vmem>>, vector<64x1xf32>,
      %cst_32 = arith.constant 0.000000e+00 : f32
      %57 = vector.broadcast %cst_32 : f32 to vector<64x1xf32>
      %c0_33 = arith.constant 0 : index
      %c0_34 = arith.constant 0 : index
      %58 = vector.load %arg8[%c0_33, %c0_34] : memref<64x1xf32, #tpu.memory_space<vmem>>, vector<64x1xf32>
      tpu.vector_store %arg8[%c0_33, %c0_34], %57 {strides = array<i32>} : memref<64x1xf32, #tpu.memory_space<vmem>>, vector<64x1xf32>,
      %cst_35 = arith.constant 0.000000e+00 : f32
      %59 = vector.broadcast %cst_35 : f32 to vector<64x1xf32>
      %c0_36 = arith.constant 0 : index
      %c0_37 = arith.constant 0 : index
      %60 = vector.load %arg9[%c0_36, %c0_37] : memref<64x1xf32, #tpu.memory_space<vmem>>, vector<64x1xf32>
      tpu.vector_store %arg9[%c0_36, %c0_37], %59 {strides = array<i32>} : memref<64x1xf32, #tpu.memory_space<vmem>>, vector<64x1xf32>,
    } else {
    }
    %c0 = arith.constant 0 : index
    %c0_1 = arith.constant 0 : index
    %3 = vector.load %arg2[%c0, %c0_1] : memref<64x128xf32, #tpu.memory_space<vmem>>, vector<64x128xf32>
    %c0_2 = arith.constant 0 : index
    %c0_3 = arith.constant 0 : index
    %4 = vector.load %arg3[%c0_2, %c0_3] : memref<128x128xf32, #tpu.memory_space<vmem>>, vector<128x128xf32>
    %cst = arith.constant dense<0.000000e+00> : vector<64x128xf32>
    %5 = tpu.matmul %3, %4, %cst {dimension_numbers = #tpu.dot_dimension_numbers<[1], [0], [0], [1], [0, 0, 1, 1], [], []>} : vector<64x128xf32>, vector<128x128xf32>, vector<64x128xf32> -> vector<64x128xf32>
    %c0_4 = arith.constant 0 : index
    %c0_5 = arith.constant 0 : index
    %6 = vector.load %arg4[%c0_4, %c0_5] : memref<64x1xf32, #tpu.memory_space<vmem>>, vector<64x1xf32>
    %cst_6 = arith.constant 14.2857141 : f32
    %7 = vector.broadcast %cst_6 : f32 to vector<64x1xf32>
    %8 = arith.mulf %6, %7 : vector<64x1xf32>
    %9 = vector.broadcast %8 : vector<64x1xf32> to vector<64x128xf32>
    %10 = arith.mulf %5, %9 : vector<64x128xf32>
    %c0_7 = arith.constant 0 : index
    %c0_8 = arith.constant 0 : index
    %11 = vector.load %arg5[%c0_7, %c0_8] : memref<1x128xf32, #tpu.memory_space<vmem>>, vector<1x128xf32>
    %12 = vector.broadcast %11 : vector<1x128xf32> to vector<64x128xf32>
    %13 = arith.mulf %10, %12 : vector<64x128xf32>
    %14 = tpu.iota {dimensions = array<i32: 0>} : vector<64x128xi32>
    %c64_i32 = arith.constant 64 : i32
    %15 = arith.muli %arg0, %c64_i32 : i32
    %16 = vector.broadcast %15 : i32 to vector<64x128xi32>
    %17 = arith.addi %14, %16 : vector<64x128xi32>
    %18 = tpu.iota {dimensions = array<i32: 1>} : vector<64x128xi32>
    %c128_i32 = arith.constant 128 : i32
    %19 = arith.muli %arg1, %c128_i32 : i32
    %20 = vector.broadcast %19 : i32 to vector<64x128xi32>
    %21 = arith.addi %18, %20 : vector<64x128xi32>
    %22 = arith.cmpi eq, %21, %17 : vector<64x128xi32>
    %c0_9 = arith.constant 0 : index
    %c0_10 = arith.constant 0 : index
    %23 = vector.load %arg9[%c0_9, %c0_10] : memref<64x1xf32, #tpu.memory_space<vmem>>, vector<64x1xf32>
    %cst_11 = arith.constant 0.000000e+00 : f32
    %24 = vector.broadcast %cst_11 : f32 to vector<64x128xf32>
    %25 = arith.select %22, %13, %24 : vector<64x128xi1>, vector<64x128xf32>
    %cst_12 = arith.constant dense<0.000000e+00> : vector<64xf32>
    %26 = vector.multi_reduction <add>, %25, %cst_12 [1] : vector<64x128xf32> to vector<64xf32>
    %27 = vector.shape_cast %26 : vector<64xf32> to vector<64x1xf32>
    %28 = arith.addf %23, %27 : vector<64x1xf32>
    %c0_13 = arith.constant 0 : index
    %c0_14 = arith.constant 0 : index
    %29 = vector.load %arg9[%c0_13, %c0_14] : memref<64x1xf32, #tpu.memory_space<vmem>>, vector<64x1xf32>
    tpu.vector_store %arg9[%c0_13, %c0_14], %28 {strides = array<i32>} : memref<64x1xf32, #tpu.memory_space<vmem>>, vector<64x1xf32>,
    %c250_i32 = arith.constant 250 : i32
    %30 = vector.broadcast %c250_i32 : i32 to vector<64x128xi32>
    %31 = arith.cmpi sge, %21, %30 : vector<64x128xi32>
    %32 = arith.ori %22, %31 : vector<64x128xi1>
    %cst_15 = arith.constant -1.000000e+30 : f32
    %33 = vector.broadcast %cst_15 : f32 to vector<64x128xf32>
    %34 = arith.select %32, %33, %13 : vector<64x128xi1>, vector<64x128xf32>
    %c0_16 = arith.constant 0 : index
    %c0_17 = arith.constant 0 : index
    %35 = vector.load %arg7[%c0_16, %c0_17] : memref<64x1xf32, #tpu.memory_space<vmem>>, vector<64x1xf32>
    %cst_18 = arith.constant dense<0xFF800000> : vector<64xf32>
    %36 = vector.multi_reduction <maximumf>, %34, %cst_18 [1] : vector<64x128xf32> to vector<64xf32>
    %37 = vector.shape_cast %36 : vector<64xf32> to vector<64x1xf32>
    %38 = arith.maximumf %35, %37 : vector<64x1xf32>
    %c0_19 = arith.constant 0 : index
    %c0_20 = arith.constant 0 : index
    %39 = vector.load %arg8[%c0_19, %c0_20] : memref<64x1xf32, #tpu.memory_space<vmem>>, vector<64x1xf32>
    %c0_21 = arith.constant 0 : index
    %c0_22 = arith.constant 0 : index
    %40 = vector.load %arg7[%c0_21, %c0_22] : memref<64x1xf32, #tpu.memory_space<vmem>>, vector<64x1xf32>
    %41 = arith.subf %40, %38 : vector<64x1xf32>
    %42 = math.exp %41 : vector<64x1xf32>
    %43 = arith.mulf %39, %42 : vector<64x1xf32>
    %44 = vector.broadcast %38 : vector<64x1xf32> to vector<64x128xf32>
    %45 = arith.subf %34, %44 : vector<64x128xf32>
    %46 = math.exp %45 : vector<64x128xf32>
    %cst_23 = arith.constant dense<0.000000e+00> : vector<64xf32>
    %47 = vector.multi_reduction <add>, %46, %cst_23 [1] : vector<64x128xf32> to vector<64xf32>
    %48 = vector.shape_cast %47 : vector<64xf32> to vector<64x1xf32>
    %49 = arith.addf %43, %48 : vector<64x1xf32>
    %c0_24 = arith.constant 0 : index
    %c0_25 = arith.constant 0 : index
    %50 = vector.load %arg8[%c0_24, %c0_25] : memref<64x1xf32, #tpu.memory_space<vmem>>, vector<64x1xf32>
    tpu.vector_store %arg8[%c0_24, %c0_25], %49 {strides = array<i32>} : memref<64x1xf32, #tpu.memory_space<vmem>>, vector<64x1xf32>,
    %c0_26 = arith.constant 0 : index
    %c0_27 = arith.constant 0 : index
    %51 = vector.load %arg7[%c0_26, %c0_27] : memref<64x1xf32, #tpu.memory_space<vmem>>, vector<64x1xf32>
    tpu.vector_store %arg7[%c0_26, %c0_27], %38 {strides = array<i32>} : memref<64x1xf32, #tpu.memory_space<vmem>>, vector<64x1xf32>,
    %c1_i32 = arith.constant 1 : i32
    %52 = arith.cmpi eq, %arg1, %c1_i32 : i32
    %53 = arith.extui %52 : i1 to i32
    %c0_i32_28 = arith.constant 0 : i32
    %54 = arith.cmpi ne, %53, %c0_i32_28 : i32
    scf.if %54 {
      %c0_29 = arith.constant 0 : index
      %c0_30 = arith.constant 0 : index
      %55 = vector.load %arg7[%c0_29, %c0_30] : memref<64x1xf32, #tpu.memory_space<vmem>>, vector<64x1xf32>
      %c0_31 = arith.constant 0 : index
      %c0_32 = arith.constant 0 : index
      %56 = vector.load %arg8[%c0_31, %c0_32] : memref<64x1xf32, #tpu.memory_space<vmem>>, vector<64x1xf32>
      %57 = math.log %56 : vector<64x1xf32>
      %58 = arith.addf %55, %57 : vector<64x1xf32>
      %c0_33 = arith.constant 0 : index
      %c0_34 = arith.constant 0 : index
      %59 = vector.load %arg9[%c0_33, %c0_34] : memref<64x1xf32, #tpu.memory_space<vmem>>, vector<64x1xf32>
      %60 = arith.subf %58, %59 : vector<64x1xf32>
      %c0_35 = arith.constant 0 : index
      %c0_36 = arith.constant 0 : index
      %61 = vector.load %arg6[%c0_35, %c0_36] : memref<64x1xf32, #tpu.memory_space<vmem>>, vector<64x1xf32>
      tpu.vector_store %arg6[%c0_35, %c0_36], %60 {strides = array<i32>} : memref<64x1xf32, #tpu.memory_space<vmem>>, vector<64x1xf32>,
    } else {
    }
    return
  }
  func.func @transform_0(%arg0: i32, %arg1: i32) -> (i32, i32) {
    %c0_i32 = arith.constant 0 : i32
    %c0_i32_0 = arith.constant 0 : i32
    return %arg0, %c0_i32 : i32, i32
  }
  func.func @transform_1(%arg0: i32, %arg1: i32) -> (i32, i32) {
    %c0_i32 = arith.constant 0 : i32
    %c0_i32_0 = arith.constant 0 : i32
    return %c0_i32, %arg1 : i32, i32
  }
  func.func @transform_2(%arg0: i32, %arg1: i32) -> (i32, i32) {
    %c0_i32 = arith.constant 0 : i32
    %c0_i32_0 = arith.constant 0 : i32
    return %arg0, %c0_i32 : i32, i32
  }
  func.func @transform_3(%arg0: i32, %arg1: i32) -> (i32, i32) {
    %c0_i32 = arith.constant 0 : i32
    %c0_i32_0 = arith.constant 0 : i32
    return %c0_i32, %arg1 : i32, i32
  }
  func.func @transform_4(%arg0: i32, %arg1: i32) -> (i32, i32) {
    %c0_i32 = arith.constant 0 : i32
    %c0_i32_0 = arith.constant 0 : i32
    return %arg0, %c0_i32 : i32, i32
  }
}

</mosaic_0001>

<bundles_post_ra>
// kernel: tpu_custom_call.1
= control target key start
LH: loop header
LB: loop body
LE: loop exit
PB: predicated region body
PF: predicated region fallthrough
CT: control target
= control target key end

     0   :  { %9 = vsyncpa [#allocation6], 0  ;;  %s1916_s0 = inlined_call_operand.vmem [shape: f32[256,128], index: 0, kind: input, shape index: {}]   ;;  %s1917_s1 = inlined_call_operand.hbm [shape: f32[128,256], index: 1, kind: input, shape index: {}]   ;;  %s1918_s2 = inlined_call_operand.vmem [shape: f32[256,1], index: 2, kind: input, shape index: {}]   ;;  %s1919_s3 = inlined_call_operand.vmem [shape: f32[1,256], index: 3, kind: input, shape index: {}]   ;;  %s1920_s4 = inlined_call_operand.vmem [shape: f32[256,1], index: 4, kind: output, shape index: {}]  }
   0x1   :  { %11 = vsyncpa [#allocation6 + $0x1], 0  ;;  %s1373_s15 = smov 0   ;;  %s1375_s16 = smov 0  }
   0x2   :  { %s1377_s17 = smov 0   ;;  %s1379_s18 = smov 0  }
   0x3   :  { %s1381_s19 = smov 0   ;;  %s1383_s20 = smov 0  }
   0x4   :  { %s1385_s21 = smov 0   ;;  %s1387_s22 = smov 0  }
   0x5 LB: > { %s979_s23 = sadd.s32 4294967295, %s1339_s22   ;;  %s26_s24 = sadd.s32 1, %s1331_s20  ;;  %s1339_s22 = sphi %s1387_s22, %s17_s22   ;;  %s1335_s21 = sphi %s1385_s21, %s1933_s21   ;;  %s1331_s20 = sphi %s1383_s20, %s1932_s20   ;;  %s1327_s19 = sphi %s1381_s19, %s1931_s19   ;;  %s1323_s18 = sphi %s1379_s18, %s1930_s18   ;;  %s1319_s17 = sphi %s1377_s17, %s1929_s17   ;;  %s1315_s16 = sphi %s1375_s16, %s1928_s16   ;;  %s1311_s15 = sphi %s1373_s15, %s1927_s15  }
   0x6   : > { %p27_p0 = scmp.ge.s32.totalorder %s26_s24, 2  ;;  %s29_s25 = sadd.s32 1, %s1335_s21 }
   0x7   : > { %s62_s26 = sadd.s32 1, %s1319_s17  ;;  %p69_p1 = scmp.ne.s32.totalorder %s1319_s17, %s1315_s16 }
   0x8   : > { %s1935_s24 = smov (%p27_p0, %s26_s24), 0  ;;  %s1937_s25 = smov (!%p27_p0, %s29_s25), %s1335_s21 }
   0x9   : > { %s59_s27 = ssub.s32 %s1331_s20, %s1935_s24  ;;  %p70_p2 = scmp.eq.s32.totalorder %s1339_s22, 0 }
   0xa   : > { %p31_p3 = scmp.ge.s32.totalorder %s1937_s25, 4  ;;  %p60_p4 = scmp.eq.s32.totalorder %s59_s27, 0 }
   0xb   : > { %p1423_p5 = por %p70_p2, %p69_p1  ;;  %p75_p6 = scmp.ne.s32.totalorder %s1315_s16, %s1311_s15 }
   0xc   : > { %s1939_s25 = smov (%p31_p3, %s1937_s25), 0  ;;  %p76_p7 = scmp.eq.s32.totalorder %s979_s23, 0 }
   0xd   : > { %s1431_s29 = scalar_select %p60_p4, %s1319_s17, %s62_s26  }
   0xe   : > { %p1122_p8 = scmp.lt.s32.totalorder %s1339_s22, 8  ;;  %s186_s30 = sand.u32 1, %s1319_s17  }
   0xf   : > { %p1435_p9 = por %p76_p7, %p75_p6  ;;  %s983_s6 = sshll.u32 %s186_s30, 7 }
  0x10   : > { %s984_s7 = sshll.u32 %s1331_s20, 7  ;;  %s190_s11 = scalar_lea.vmem [#allocation5], %s983_s6 }
  0x11   : > { %s1443_s10 = scalar_lea.hbm %s1917_s1, %s984_s7  ;;  %s196_s12 = sshll.u32 %s190_s11, 4  ;;  %s1451_s12 = int_to_ptr.vmem [resolvable:$true] %s196_s12 }
  0x12   : > { %p1447_p10 = pnand %p1122_p8, %p1423_p5  ;;  %s1454_s14 = scalar_lea.sflag [#allocation6], %s186_s30 }
  0x13   : > { %s1243_s15 = scalar_lea.hbm %s1443_s10, 2048  ;;  %s1248_s27 = scalar_lea.hbm %s1917_s1, 4096 }
  0x14   : > { %p1244_p12 = scmp.ne.s32.totalorder %s1443_s10, %s1243_s15  ;;  %p1245_p13 = pneg %p1447_p10 }
  0x15   : > { %p1249_p2 = scmp.lt.u32.totalorder %s1443_s10, %s1917_s1  ;;  %p1250_p3 = scmp.lt.u32.totalorder %s1248_s27, %s1243_s15 }
  0x16   : > { %p1246_p0 = pnand %p1245_p13, %p1244_p12  ;;  %p1252_p5 = scmp.lt.u32.totalorder %s1243_s15, %s1443_s10 }
  0x17   : > { %p1251_p4 = por %p1250_p3, %p1249_p2 }
  0x18   : > { %p1247_p1 = pneg %p1246_p0 }
  0x19   : > { %p1253_p6 = por %p1252_p5, %p1251_p4 }
  0x1b   : > { %p1254_p7 = pnand %p1253_p6, %p1247_p1 }
  0x1d   : > { %1257 = shalt.err (!%p1254_p7)
}
  0x1e   : > { %s1258_s30 = scalar_lea.vmem %s1451_s12, 2048  ;;  %s1341_s7 = smov [#allocation5]  }
  0x1f   : > { %p1259_p8 = scmp.ne.s32.totalorder %s1451_s12, %s1258_s30  ;;  %s1263_s8 = sshll.u32 %s1341_s7, 4  ;;  %s1264_s8 = int_to_ptr.vmem [resolvable:$false] %s1263_s8 }
  0x20   : > { %s1265_s9 = scalar_lea.vmem %s1264_s8, 4096  ;;  %p1266_p11 = scmp.lt.s32.totalorder %s1451_s12, %s1264_s8 }
  0x21   : > { %p1261_p12 = pnand %p1259_p8, %p1245_p13  ;;  %p1267_p2 = scmp.lt.s32.totalorder %s1265_s9, %s1258_s30 }
  0x23   : > { %p1262_p0 = pneg %p1261_p12  ;;  %p1268_p3 = por %p1267_p2, %p1266_p11 }
  0x25   : > { %p1269_p4 = pnand %p1268_p3, %p1262_p0 }
  0x27   : > { %1272 = shalt.err (!%p1269_p4)
}
  0x28   : > { %s1342_s11 = smov 256   ;;  %s1343_s15 = smov 128  }
  0x29   : > { %s1344_s23 = smov 8   ;;  %p219_p13 = scmp.lt.s32.totalorder %s1339_s22, 9 }
  0x2a   : > { %1121 = dma.hbm_to_vmem [thread:$0]  (!%p1447_p10), %s1443_s10, 2048, %s1451_s12, %s1454_s14, %s1342_s11, %s1343_s15, %s1344_s23  }
  0x2b   : > { %p1924_p1 = scmp.ge.s32.totalorder %s1339_s22, 1 }
  0x2d   : > { %p220_p5 = pnand %p1924_p1, %p219_p13 }
  0x2e   : > { %s225_s26 = sand.u32 (!%p220_p5), 1, %s1315_s16  }
  0x2f   : > { %223 = sbr.rel (%p220_p5) target bundleno = 798 (0x31e), region = 36  ;;  %s986_s27 = sshll.u32 (!%p220_p5), %s225_s26, 7 }
  0x30   : > { %s226_s28 = scalar_lea.sflag (!%p220_p5), [#allocation6], %s225_s26  ;;  %s1486_s6 = scalar_lea.vmem (!%p220_p5), [#allocation5], %s986_s27 }
  0x36   : > { %1306 = dma.done.wait (%p1435_p9), %s226_s28, 2048  }
  0x37   : > { %1308 = vsyncadd (%p1435_p9), %s226_s28, 4294965248  ;;  %s987_s10 = sshll.u32 %s1327_s19, 3  ;;  %p279_p10 = scmp.lt.s32.totalorder %s1323_s18, 1 }
  0x38   : > { %p268_p11 = scmp.lt.s32.totalorder %s987_s10, 31  ;;  %p993_p9 = scmp.ne.s32.totalorder %s1323_s18, 0 }
  0x39   : > { %s1495_s12 = scalar_select %p279_p10, %s1323_s18, 1 }
  0x3a   : > { %s1941_s10 = smov (!%p268_p11, %s987_s10), 31  ;;  %291 = sbr.rel (%p993_p9) target bundleno = 72 (0x48), region = 44 }
  0x3b   : > { %s281_s30 = scalar_lea.vmem %s1919_s3, %s1495_s12  ;;  %s988_s7 = sshll.u32 %s1941_s10, 3  ;;  %vm292_vm0 = vcmask (!%p993_p9), 7168   ;;  %v1345_v0 = vmov (!%p993_p9), -1e+30   ;;  %v1346_v1 = vmov (!%p993_p9), 0.0  }
  0x3c   : > { %s1504_s5 = scalar_lea.vmem %s1916_s0, %s988_s7  ;;  %s1509_s23 = scalar_lea.vmem %s1918_s2, %s988_s7  ;;  %293 = vst.msk [vmem:[#allocation2] sm:$0xff] (!%p993_p9), %vm292_vm0, %v1345_v0  ;;  %294 = vst.msk [vmem:[#allocation2 + $0x8] sm:$0xff] (!%p993_p9), %vm292_vm0, %v1345_v0 }
  0x3d   : > { %s1514_s28 = scalar_lea.vmem %s1920_s4, %s988_s7  ;;  %295 = vst.msk [vmem:[#allocation2 + $0x10] sm:$0xff] (!%p993_p9), %vm292_vm0, %v1345_v0  ;;  %296 = vst.msk [vmem:[#allocation2 + $0x18] sm:$0xff] (!%p993_p9), %vm292_vm0, %v1345_v0 }
  0x3e   : > { %297 = vst.msk [vmem:[#allocation2 + $0x20] sm:$0xff] (!%p993_p9), %vm292_vm0, %v1345_v0  ;;  %298 = vst.msk [vmem:[#allocation2 + $0x28] sm:$0xff] (!%p993_p9), %vm292_vm0, %v1345_v0 }
  0x3f   : > { %299 = vst.msk [vmem:[#allocation2 + $0x30] sm:$0xff] (!%p993_p9), %vm292_vm0, %v1345_v0  ;;  %300 = vst.msk [vmem:[#allocation2 + $0x38] sm:$0xff] (!%p993_p9), %vm292_vm0, %v1345_v0 }
  0x40   : > { %301 = vst.msk [vmem:[#allocation3] sm:$0xff] (!%p993_p9), %vm292_vm0, %v1346_v1  ;;  %302 = vst.msk [vmem:[#allocation3 + $0x8] sm:$0xff] (!%p993_p9), %vm292_vm0, %v1346_v1 }
  0x41   : > { %303 = vst.msk [vmem:[#allocation3 + $0x10] sm:$0xff] %vm292_vm0, %v1346_v1  ;;  %304 = vst.msk [vmem:[#allocation3 + $0x18] sm:$0xff] %vm292_vm0, %v1346_v1 }
  0x42   : > { %305 = vst.msk [vmem:[#allocation3 + $0x20] sm:$0xff] %vm292_vm0, %v1346_v1  ;;  %306 = vst.msk [vmem:[#allocation3 + $0x28] sm:$0xff] %vm292_vm0, %v1346_v1 }
  0x43   : > { %307 = vst.msk [vmem:[#allocation3 + $0x30] sm:$0xff] %vm292_vm0, %v1346_v1  ;;  %308 = vst.msk [vmem:[#allocation3 + $0x38] sm:$0xff] %vm292_vm0, %v1346_v1 }
  0x44   : > { %309 = vst.msk [vmem:[#allocation4] sm:$0xff] %vm292_vm0, %v1346_v1  ;;  %310 = vst.msk [vmem:[#allocation4 + $0x8] sm:$0xff] %vm292_vm0, %v1346_v1 }
  0x45   : > { %311 = vst.msk [vmem:[#allocation4 + $0x10] sm:$0xff] %vm292_vm0, %v1346_v1  ;;  %312 = vst.msk [vmem:[#allocation4 + $0x18] sm:$0xff] %vm292_vm0, %v1346_v1 }
  0x46   : > { %313 = vst.msk [vmem:[#allocation4 + $0x20] sm:$0xff] %vm292_vm0, %v1346_v1  ;;  %314 = vst.msk [vmem:[#allocation4 + $0x28] sm:$0xff] %vm292_vm0, %v1346_v1 }
  0x47   : > { %315 = vst.msk [vmem:[#allocation4 + $0x30] sm:$0xff] %vm292_vm0, %v1346_v1  ;;  %316 = vst.msk [vmem:[#allocation4 + $0x38] sm:$0xff] %vm292_vm0, %v1346_v1 }
  0x48 PF: > { %v325_v2 = vld [vmem:[%s1486_s6] sm:$0xff]  ;;  %v326_v3 = vld [vmem:[%s1486_s6 + $0x8] sm:$0xff]  ;;  %v327_v4 = vld [vmem:[%s1486_s6 + $0x10] sm:$0xff]  ;;  %v1347_v7 = vmov 0   ;;  %v525_v51 = vlaneseq  ;;  %s996_s10 = sshll.u32 %s1323_s18, 7  ;;  %p997_p6 = scmp.ne.s32.totalorder %s1323_s18, 1 }
  0x49   : > { %v1068_v5 = vpack.c.bf16 %v326_v3, %v325_v2  ;;  %v328_v6 = vld [vmem:[%s1486_s6 + $0x18] sm:$0xff]  ;;  %1194 = vset.pattern.permute.xlu1 %v1347_v7  ;;  %1193 = vset.pattern.permute.xlu0 %v1347_v7  ;;  %v329_v9 = vld [vmem:[%s1486_s6 + $0x20] sm:$0xff]  ;;  %v330_v10 = vld [vmem:[%s1486_s6 + $0x28] sm:$0xff]  ;;  %v547_v59 = vstv %s996_s10 }
  0x4a   : > { %v1072_v8 = vpack.c.bf16 %v328_v6, %v327_v4  ;;  %v1076_v11 = vpack.c.bf16 %v330_v10, %v329_v9  ;;  %v317_v12 = vld [vmem:[%s1504_s5] sm:$0xff]  ;;  %v331_v14 = vld [vmem:[%s1486_s6 + $0x30] sm:$0xff]  ;;  %v332_v15 = vld [vmem:[%s1486_s6 + $0x38] sm:$0xff]  ;;  %v526_v53 = vshrl.u32 %v525_v51, 7  ;;  %v545_v56 = vand.u32 127, %v525_v51 }
  0x4b   : > { %1069 = vmatprep.subr.bf16.mxu0 %v1068_v5  ;;  %1100 = vmatprep.subr.bf16.mxu1 %v1068_v5  ;;  %v321_v13 = vld [vmem:[%s1504_s5 + $0x20] sm:$0xff]  ;;  %v448_v16 = vld [vmem:[%s1509_s23 + $0x10] sm:$0xff]  ;;  %v449_v17 = vld [vmem:[%s1509_s23 + $0x18] sm:$0xff]  ;;  %v1080_v18 = vpack.c.bf16 %v332_v15, %v331_v14 }
  0x4c   : > { %1071 = vmatpush3.bf16.msra.mxu0 %v1068_v5  ;;  %1108 = vmatpush3.bf16.msra.mxu1 %v1068_v5  ;;  %v456_v19 = vmul.f32 14.285714, %v448_v16  ;;  %v333_v20 = vld [vmem:[%s1486_s6 + $0x40] sm:$0xff]  ;;  %v334_v21 = vld [vmem:[%s1486_s6 + $0x48] sm:$0xff]  ;;  %v457_v23 = vmul.f32 14.285714, %v449_v17  ;;  %v1580_v0 = vadd.s32 %v547_v59, %v545_v56 }
  0x4d   : > { %1073 = vmatprep.subr.bf16.mxu0 %v1072_v8  ;;  %1101 = vmatprep.subr.bf16.mxu1 %v1072_v8  ;;  %v446_v22 = vld [vmem:[%s1509_s23] sm:$0xff]  ;;  %v447_v25 = vld [vmem:[%s1509_s23 + $0x8] sm:$0xff]  ;;  %v1084_v27 = vpack.c.bf16 %v334_v21, %v333_v20  ;;  %v335_v28 = vld [vmem:[%s1486_s6 + $0x50] sm:$0xff]  ;;  %v531_v55 = vadd.s32 40, %v526_v53  ;;  %v527_v60 = vadd.s32 8, %v526_v53  ;;  %v530_v62 = vadd.s32 32, %v526_v53 }
  0x4e   : > { %1056 = vmatprep.mubr.f32.mxu0 %v317_v12  ;;  %1062 = vmatprep.mubr.f32.mxu1 %v321_v13  ;;  %v454_v24 = vmul.f32 14.285714, %v446_v22  ;;  %v451_v26 = vld [vmem:[%s1509_s23 + $0x28] sm:$0xff]  ;;  %v336_v29 = vld [vmem:[%s1486_s6 + $0x58] sm:$0xff]  ;;  %v455_v30 = vmul.f32 14.285714, %v447_v25 }
  0x4f   : > { %474 = vperm.xlu1 %1194, %v456_v19   ;;  %v459_v31 = vmul.f32 14.285714, %v451_v26  ;;  %v450_v32 = vld [vmem:[%s1509_s23 + $0x20] sm:$0xff]  ;;  %v453_v33 = vld [vmem:[%s1509_s23 + $0x38] sm:$0xff]  ;;  %v1088_v34 = vpack.c.bf16 %v336_v29, %v335_v28  ;;  %v338_v36 = vld [vmem:[%s1486_s6 + $0x68] sm:$0xff]  ;;  %vm606_vm2 = vcmp.ge.s32.totalorder %v1580_v0, 250 }
  0x50   : > { %1075 = vmatpush3.bf16.msra.mxu0 %v1072_v8  ;;  %1109 = vmatpush3.bf16.msra.mxu1 %v1072_v8  ;;  %v337_v35 = vld [vmem:[%s1486_s6 + $0x60] sm:$0xff]  ;;  %v458_v37 = vmul.f32 14.285714, %v450_v32  ;;  %v461_v38 = vmul.f32 14.285714, %v453_v33  ;;  %v452_v39 = vld [vmem:[%s1509_s23 + $0x30] sm:$0xff] }
  0x51   : > { %1077 = vmatprep.subr.bf16.mxu0 %v1076_v11  ;;  %1102 = vmatprep.subr.bf16.mxu1 %v1076_v11  ;;  %v1092_v40 = vpack.c.bf16 %v338_v36, %v337_v35  ;;  %v339_v41 = vld [vmem:[%s1486_s6 + $0x70] sm:$0xff]  ;;  %v340_v42 = vld [vmem:[%s1486_s6 + $0x78] sm:$0xff]  ;;  %v460_v43 = vmul.f32 14.285714, %v452_v39  ;;  %v318_v45 = vld [vmem:[%s1504_s5 + $0x8] sm:$0xff]  ;;  %s995_s6 = sshll.u32 %s1327_s19, 6 }
  0x52   : > { %464 = vperm.xlu0 %1193, %v454_v24   ;;  %v1096_v44 = vpack.c.bf16 %v340_v42, %v339_v41  ;;  %v322_v46 = vld [vmem:[%s1504_s5 + $0x28] sm:$0xff]  ;;  %v319_v47 = vld [vmem:[%s1504_s5 + $0x10] sm:$0xff]  ;;  %v320_v49 = vld [vmem:[%s1504_s5 + $0x18] sm:$0xff]  ;;  %v1575_v58 = vstv %s995_s6  ;;  %v529_v5 = vadd.s32 24, %v526_v53  ;;  %v532_v7 = vadd.s32 48, %v526_v53 }
  0x53   : > { %479 = vperm.xlu1 %1194, %v457_v23   ;;  %v323_v48 = vld [vmem:[%s1504_s5 + $0x30] sm:$0xff]  ;;  %v324_v50 = vld [vmem:[%s1504_s5 + $0x38] sm:$0xff]  ;;  %v1578_v63 = vadd.s32 %v1575_v58, %v531_v55  ;;  %v1583_v1 = vadd.s32 %v1575_v58, %v527_v60  ;;  %v1586_v3 = vadd.s32 %v1575_v58, %v530_v62  ;;  %v1592_v4 = vadd.s32 %v1575_v58, %v526_v53  ;;  %v994_v10 = vld [vmem:[%s281_s30] ss:$0 sm:$0xff] }
  0x54   : > { %1079 = vmatpush3.bf16.msra.mxu0 %v1076_v11  ;;  %1110 = vmatpush3.bf16.msra.mxu1 %v1076_v11  ;;  %v1627_v22 = vadd.s32 %v1575_v58, %v532_v7  ;;  %v528_v23 = vadd.s32 16, %v526_v53  ;;  %v533_v35 = vadd.s32 56, %v526_v53  ;;  %v1718_v51 = vld [vmem:[#allocation2 + $0x8] sm:$0xff]  ;;  %v1726_v56 = vld [vmem:[#allocation2 + $0x20] sm:$0xff] }
  0x55   : > { %1081 = vmatprep.subr.bf16.mxu0 %v1080_v18  ;;  %1103 = vmatprep.subr.bf16.mxu1 %v1080_v18  ;;  %vm554_vm1 = vcmp.eq.s32.totalorder %v1580_v0, %v1578_v63  ;;  %vm550_vm3 = vcmp.eq.s32.totalorder %v1580_v0, %v1583_v1  ;;  %vm553_vm5 = vcmp.eq.s32.totalorder %v1580_v0, %v1586_v3 }
  0x56   : > { %469 = vperm.xlu0 %1193, %v455_v30   ;;  %vm1606_vm4 = vmor %vm554_vm1, %vm606_vm2  ;;  %vm549_vm7 = vcmp.eq.s32.totalorder %v1580_v0, %v1592_v4  ;;  %vm555_vm11 = vcmp.eq.s32.totalorder %v1580_v0, %v1627_v22  ;;  %v1685_v41 = vadd.s32 %v1575_v58, %v533_v35 }
  0x57   : > { %489 = vperm.xlu1 %1194, %v459_v31   ;;  %vm608_vm6 = vmor %vm550_vm3, %vm606_vm2 }
  0x58   : > { %1083 = vmatpush3.bf16.msra.mxu0 %v1080_v18  ;;  %1111 = vmatpush3.bf16.msra.mxu1 %v1080_v18  ;;  %v1620_v18 = vadd.s32 %v1575_v58, %v529_v5  ;;  %vm611_vm8 = vmor %vm553_vm5, %vm606_vm2  ;;  %vm556_vm0 = vcmp.eq.s32.totalorder %v1580_v0, %v1685_v41  ;;  %v1746_v5 = vld [vmem:[#allocation2 + $0x30] sm:$0xff] }
  0x59   : > { %1085 = vmatprep.subr.bf16.mxu0 %v1084_v27  ;;  %1104 = vmatprep.subr.bf16.mxu1 %v1084_v27  ;;  %vm607_vm9 = vmor %vm549_vm7, %vm606_vm2 }
  0x5a   : > { %484 = vperm.xlu0 %1193, %v458_v37   ;;  %vm552_vm10 = vcmp.eq.s32.totalorder %v1580_v0, %v1620_v18  ;;  %vm613_vm13 = vmor %vm555_vm11, %vm606_vm2 }
  0x5b   : > { %499 = vperm.xlu1 %1194, %v461_v38   ;;  %vm610_vm12 = vmor %vm552_vm10, %vm606_vm2 }
  0x5c   : > { %1087 = vmatpush3.bf16.msra.mxu0 %v1084_v27  ;;  %1112 = vmatpush3.bf16.msra.mxu1 %v1084_v27 }
  0x5d   : > { %1089 = vmatprep.subr.bf16.mxu0 %v1088_v34  ;;  %1105 = vmatprep.subr.bf16.mxu1 %v1088_v34 }
  0x5e   : > { %494 = vperm.xlu0 %1193, %v460_v43  }
  0x60   : > { %1091 = vmatpush3.bf16.msra.mxu0 %v1088_v34  ;;  %1113 = vmatpush3.bf16.msra.mxu1 %v1088_v34  ;;  %v1658_v34 = vadd.s32 %v1575_v58, %v528_v23 }
  0x61   : > { %1093 = vmatprep.subr.bf16.mxu0 %v1092_v40  ;;  %1106 = vmatprep.subr.bf16.mxu1 %v1092_v40 }
  0x62   : > { %vm551_vm14 = vcmp.eq.s32.totalorder %v1580_v0, %v1658_v34 }
  0x63   : > { %vm609_vm15 = vmor %vm551_vm14, %vm606_vm2 }
  0x64   : > { %1095 = vmatpush3.bf16.msra.mxu0 %v1092_v40  ;;  %1114 = vmatpush3.bf16.msra.mxu1 %v1092_v40 }
  0x65   : > { %1097 = vmatprep.subr.bf16.mxu0 %v1096_v44  ;;  %1107 = vmatprep.subr.bf16.mxu1 %v1096_v44 }
  0x68   : > { %1099 = vmatpush3.bf16.msra.mxu0 %v1096_v44  ;;  %1115 = vmatpush3.bf16.msra.mxu1 %v1096_v44 }
  0x6b   : > { %1057 = vmatmul.mubr.f32.vlgmr.msra.gmra.mrb[0].mxu0 %v318_v45  ;;  %1063 = vmatmul.mubr.f32.vlgmr.msra.gmra.mrb[0].mxu1 %v322_v46 }
  0x6c   : > { %1059 = vmatprep.mubr.f32.mxu0 %v319_v47  ;;  %1065 = vmatprep.mubr.f32.mxu1 %v323_v48 }
  0x6f   : > { %1060 = vmatmul.mubr.f32.gmra.mrb[2].mxu0 %v320_v49  ;;  %1066 = vmatmul.mubr.f32.gmra.mrb[2].mxu1 %v324_v50  ;;  %v1716_v50 = vld [vmem:[#allocation2 + $0x28] sm:$0xff] }
  0xce   : > { %v475_v54 = vpop.permute.xlu1 %474 }
  0xd1   : > { %v465_v52 = vpop.permute.xlu0 %464 }
  0xd2   : > { %v480_v61 = vpop.permute.xlu1 %479 }
  0xd5   : > { %v470_v57 = vpop.permute.xlu0 %469 }
  0xd6   : > { %v490_v6 = vpop.permute.xlu1 %489 }
  0xd9   : > { %v485_v2 = vpop.permute.xlu0 %484 }
  0xda   : > { %v500_v42 = vpop.permute.xlu1 %499 }
  0xdd   : > { %v495_v19 = vpop.permute.xlu0 %494 }
 0x13e   : > { %v1058_v8 = vpop.f32.mrb[0].mxu0  ;;  %v1064_v9 = vpop.f32.mrb[0].mxu1 }
 0x13f   : > { %v503_v11 = vmul.f32 %v1058_v8, %v470_v57  ;;  %v507_v12 = vmul.f32 %v1064_v9, %v490_v6  ;;  %v407_v13 = vpop.f32.mrb[1].mxu0  ;;  %v427_v14 = vpop.f32.mrb[1].mxu1  ;;  %v1728_v57 = vld [vmem:[#allocation2] sm:$0xff]  ;;  %v1748_v6 = vld [vmem:[#allocation2 + $0x18] sm:$0xff] }
 0x140   : > { %v502_v16 = vmul.f32 %v465_v52, %v407_v13  ;;  %v506_v17 = vmul.f32 %v485_v2, %v427_v14  ;;  %v1766_v13 = vld [vmem:[#allocation2 + $0x10] sm:$0xff] }
 0x141   : > { %v1622_v20 = vmul.f32 %v994_v10, %v507_v12  ;;  %v1624_v21 = vmul.f32 %v994_v10, %v503_v11 }
 0x142   : > { %v1061_v24 = vpop.f32.mrb[2].mxu0  ;;  %v1067_v25 = vpop.f32.mrb[2].mxu1  ;;  %v1629_v26 = vmul.f32 %v994_v10, %v506_v17  ;;  %v1644_v32 = vmul.f32 %v994_v10, %v502_v16 }
 0x143   : > { %v505_v27 = vmul.f32 %v1061_v24, %v480_v61  ;;  %v417_v28 = vpop.f32.mrb[3].mxu0  ;;  %v437_v29 = vpop.f32.mrb[3].mxu1  ;;  %v1634_v30 = vsel %vm1606_vm4, -1e+30, %v1622_v20  ;;  %v1637_v31 = vsel %vm608_vm6, -1e+30, %v1624_v21  ;;  %v509_v43 = vmul.f32 %v1067_v25, %v500_v42  ;;  %vm614_vm4 = vmor %vm556_vm0, %vm606_vm2 }
 0x144   : > { %v508_v33 = vmul.f32 %v495_v19, %v437_v29  ;;  %641 = vmax.xlane.f32.xlu0 %v1634_v30  ;;  %633 = vmax.xlane.f32.xlu1 %v1637_v31  ;;  %v504_v36 = vmul.f32 %v475_v54, %v417_v28  ;;  %v1661_v37 = vsel %vm611_vm8, -1e+30, %v1629_v26  ;;  %v1664_v38 = vsel %vm607_vm9, -1e+30, %v1644_v32  ;;  %v1781_v19 = vld [vmem:[#allocation2 + $0x38] sm:$0xff] }
 0x145   : > { %v1668_v40 = vmul.f32 %v994_v10, %v505_v27  ;;  %v1704_v48 = vmul.f32 %v994_v10, %v509_v43  ;;  %vm597_vm6 = vcmask 7168   ;;  %v565_v28 = vsel %vm549_vm7, %v1644_v32, 0.0 }
 0x146   : > { %v1666_v39 = vmul.f32 %v994_v10, %v508_v33  ;;  %v519_v46 = vmul.f32 %v994_v10, %v504_v36  ;;  %v570_v35 = vsel %vm554_vm1, %v1622_v20, 0.0  ;;  %v566_v4 = vsel %vm550_vm3, %v1624_v21, 0.0 }
 0x147   : > { %v1691_v45 = vsel %vm610_vm12, -1e+30, %v1668_v40  ;;  %v1713_v49 = vsel %vm614_vm4, -1e+30, %v1704_v48  ;;  %v568_v33 = vsel %vm552_vm10, %v1668_v40, 0.0  ;;  %v572_v32 = vsel %vm556_vm0, %v1704_v48, 0.0 }
 0x148   : > { %639 = vmax.xlane.f32.xlu1 %v1661_v37  ;;  %631 = vmax.xlane.f32.xlu0 %v1664_v38  ;;  %v1688_v44 = vsel %vm613_vm13, -1e+30, %v1666_v39  ;;  %v1702_v47 = vsel %vm609_vm15, -1e+30, %v519_v46  ;;  %v567_v29 = vsel %vm551_vm14, %v519_v46, 0.0  ;;  %v569_v18 = vsel %vm553_vm5, %v1629_v26, 0.0 }
 0x149   : > { %v571_v63 = vsel %vm555_vm11, %v1666_v39, 0.0 }
 0x14c   : > { %643 = vmax.xlane.f32.xlu1 %v1688_v44  ;;  %637 = vmax.xlane.f32.xlu0 %v1691_v45 }
 0x150   : > { %635 = vmax.xlane.f32.xlu0 %v1702_v47 }
 0x154   : > { %645 = vmax.xlane.f32.xlu0 %v1713_v49 }
 0x1d1   : > { %v642_v52 = vpop.xlane.xlu0 %641  ;;  %v634_v53 = vpop.xlane.xlu1 %633 }
 0x1d2   : > { %v1721_v54 = vmax.f32 %v1716_v50, %v642_v52  ;;  %v1724_v55 = vmax.f32 %v1718_v51, %v634_v53 }
 0x1d4   : > { %v668_v58 = vsub.f32 %v1716_v50, %v1721_v54  ;;  %796 = vst.msk [vmem:[#allocation2 + $0x28] sm:$0xff] %vm597_vm6, %v1721_v54  ;;  %v664_v59 = vsub.f32 %v1718_v51, %v1724_v55  ;;  %792 = vst.msk [vmem:[#allocation2 + $0x8] sm:$0xff] %vm597_vm6, %v1724_v55  ;;  %722 = vperm.xlu1 %1194, %v1721_v54   ;;  %702 = vperm.xlu0 %1193, %v1724_v55   ;;  %v656_v54 = vld [vmem:[#allocation3 + $0x8] sm:$0xff] }
 0x1d5   : > { %v640_v60 = vpop.xlane.xlu1 %639  ;;  %v632_v61 = vpop.xlane.xlu0 %631 }
 0x1d6   : > { %v1741_v62 = vmax.f32 %v1726_v56, %v640_v60  ;;  %v1744_v2 = vmax.f32 %v1728_v57, %v632_v61 }
 0x1d8   : > { %v667_v7 = vsub.f32 %v1726_v56, %v1741_v62  ;;  %795 = vst.msk [vmem:[#allocation2 + $0x20] sm:$0xff] %vm597_vm6, %v1741_v62  ;;  %v663_v8 = vsub.f32 %v1728_v57, %v1744_v2  ;;  %791 = vst.msk [vmem:[#allocation2] sm:$0xff] %vm597_vm6, %v1744_v2  ;;  %697 = vperm.xlu1 %1194, %v1744_v2   ;;  %717 = vperm.xlu0 %1193, %v1741_v62   ;;  %v655_v62 = vld [vmem:[#allocation3] sm:$0xff] }
 0x1d9   : > { %v644_v9 = vpop.xlane.xlu1 %643  ;;  %v638_v10 = vpop.xlane.xlu0 %637 }
 0x1da   : > { %v1761_v11 = vmax.f32 %v1746_v5, %v644_v9  ;;  %v1764_v12 = vmax.f32 %v1748_v6, %v638_v10 }
 0x1dc   : > { %v669_v14 = vsub.f32 %v1746_v5, %v1761_v11  ;;  %797 = vst.msk [vmem:[#allocation2 + $0x30] sm:$0xff] %vm597_vm6, %v1761_v11  ;;  %v666_v15 = vsub.f32 %v1748_v6, %v1764_v12  ;;  %794 = vst.msk [vmem:[#allocation2 + $0x18] sm:$0xff] %vm597_vm6, %v1764_v12  ;;  %712 = vperm.xlu1 %1194, %v1764_v12   ;;  %727 = vperm.xlu0 %1193, %v1761_v11  }
 0x1dd   : > { %v636_v16 = vpop.xlane.xlu0 %635 }
 0x1de   : > { %v1779_v17 = vmax.f32 %v1766_v13, %v636_v16  ;;  %v677_v51 = vmul.f32 1.442695, %v666_v15  ;;  %v683_v50 = vmul.f32 1.442695, %v669_v14  ;;  %v659_v14 = vld [vmem:[#allocation3 + $0x20] sm:$0xff] }
 0x1e0   : > { %v665_v23 = vsub.f32 %v1766_v13, %v1779_v17  ;;  %793 = vst.msk [vmem:[#allocation2 + $0x10] sm:$0xff] %vm597_vm6, %v1779_v17  ;;  %707 = vperm.xlu1 %1194, %v1779_v17  }
 0x1e1   : > { %v646_v24 = vpop.xlane.xlu0 %645 }
 0x1e2   : > { %v1789_v25 = vmax.f32 %v1781_v19, %v646_v24  ;;  %v675_v55 = vmul.f32 1.442695, %v665_v23  ;;  %v658_v23 = vld [vmem:[#allocation3 + $0x18] sm:$0xff] }
 0x1e4   : > { %v670_v27 = vsub.f32 %v1781_v19, %v1789_v25  ;;  %798 = vst.msk [vmem:[#allocation2 + $0x38] sm:$0xff] %vm597_vm6, %v1789_v25  ;;  %732 = vperm.xlu1 %1194, %v1789_v25  }
 0x1e6   : > { %v685_v56 = vmul.f32 1.442695, %v670_v27 }
 0x1fb   : > { %573 = vadd.xlane.f32.xlu0 %v565_v28 }
 0x1ff   : > { %577 = vadd.xlane.f32.xlu0 %v567_v29  ;;  %v557_v29 = vld [vmem:[#allocation4] sm:$0xff] }
 0x203   : > { %579 = vadd.xlane.f32.xlu0 %v568_v33 }
 0x207   : > { %583 = vadd.xlane.f32.xlu0 %v570_v35  ;;  %v559_v35 = vld [vmem:[#allocation4 + $0x10] sm:$0xff] }
 0x208   : > { %575 = vadd.xlane.f32.xlu1 %v566_v4 }
 0x20b   : > { %587 = vadd.xlane.f32.xlu0 %v572_v32 }
 0x20c   : > { %581 = vadd.xlane.f32.xlu1 %v569_v18  ;;  %v560_v18 = vld [vmem:[#allocation4 + $0x18] sm:$0xff] }
 0x210   : > { %585 = vadd.xlane.f32.xlu1 %v571_v63 }
 0x253   : > { %v723_v1 = vpop.permute.xlu1 %722  ;;  %v703_v20 = vpop.permute.xlu0 %702 }
 0x254   : > { %v736_v21 = vsub.f32 %v1637_v31, %v703_v20  ;;  %v740_v34 = vsub.f32 %v1634_v30, %v723_v1  ;;  %v562_v20 = vld [vmem:[#allocation4 + $0x28] sm:$0xff] }
 0x256   : > { %v745_v36 = vmul.f32 1.442695, %v736_v21  ;;  %v753_v26 = vmul.f32 1.442695, %v740_v34  ;;  %v558_v21 = vld [vmem:[#allocation4 + $0x8] sm:$0xff] }
 0x257   : > { %v698_v40 = vpop.permute.xlu1 %697  ;;  %v718_v41 = vpop.permute.xlu0 %717 }
 0x258   : > { %v735_v42 = vsub.f32 %v1664_v38, %v698_v40  ;;  %v739_v3 = vsub.f32 %v1661_v37, %v718_v41  ;;  %1195 = vpow2.f32 %v745_v36 }
 0x25a   : > { %v743_v43 = vmul.f32 1.442695, %v735_v42  ;;  %v751_v46 = vmul.f32 1.442695, %v739_v3  ;;  %v564_v42 = vld [vmem:[#allocation4 + $0x38] sm:$0xff]  ;;  %v561_v3 = vld [vmem:[#allocation4 + $0x20] sm:$0xff] }
 0x25b   : > { %v713_v0 = vpop.permute.xlu1 %712  ;;  %v728_v39 = vpop.permute.xlu0 %727 }
 0x25c   : > { %1197 = vpow2.f32 %v743_v43  ;;  %v738_v22 = vsub.f32 %v1691_v45, %v713_v0  ;;  %v741_v30 = vsub.f32 %v1688_v44, %v728_v39 }
 0x25d   : > { %1199 = vpow2.f32 %v753_v26 }
 0x25e   : > { %v749_v31 = vmul.f32 1.442695, %v738_v22  ;;  %1201 = vpow2.f32 %v751_v46  ;;  %v755_v53 = vmul.f32 1.442695, %v741_v30  ;;  %v563_v22 = vld [vmem:[#allocation4 + $0x30] sm:$0xff] }
 0x25f   : > { %v708_v48 = vpop.permute.xlu1 %707  ;;  %v673_v30 = vmul.f32 1.442695, %v664_v59 }
 0x260   : > { %1203 = vpow2.f32 %v749_v31  ;;  %v737_v38 = vsub.f32 %v1702_v47, %v708_v48  ;;  %v671_v48 = vmul.f32 1.442695, %v663_v8 }
 0x262   : > { %v747_v52 = vmul.f32 1.442695, %v737_v38  ;;  %v1196_v37 = vpop.eup %1195  ;;  %v681_v38 = vmul.f32 1.442695, %v668_v58 }
 0x263   : > { %v733_v60 = vpop.permute.xlu1 %732  ;;  %761 = vadd.xlane.f32.xlu0 %v1196_v37 }
 0x264   : > { %1205 = vpow2.f32 %v747_v52  ;;  %v742_v61 = vsub.f32 %v1713_v49, %v733_v60  ;;  %v679_v52 = vmul.f32 1.442695, %v667_v7  ;;  %v660_v7 = vld [vmem:[#allocation3 + $0x28] sm:$0xff] }
 0x265   : > { %1207 = vpow2.f32 %v755_v53 }
 0x266   : > { %v1198_v9 = vpop.eup %1197  ;;  %v757_v45 = vmul.f32 1.442695, %v742_v61  ;;  %v657_v61 = vld [vmem:[#allocation3 + $0x10] sm:$0xff] }
 0x267   : > { %v1200_v10 = vpop.eup %1199  ;;  %759 = vadd.xlane.f32.xlu1 %v1198_v9 }
 0x268   : > { %1209 = vpow2.f32 %v757_v45  ;;  %769 = vadd.xlane.f32.xlu0 %v1200_v10  ;;  %v1202_v44 = vpop.eup %1201 }
 0x269   : > { %1211 = vpow2.f32 %v673_v30  ;;  %v805_v30 = vld [vmem:[#allocation2 + $0x10] sm:$0xff] (!%p997_p6) }
 0x26a   : > { %v1204_v16 = vpop.eup %1203  ;;  %1213 = vpow2.f32 %v671_v48 }
 0x26b   : > { %767 = vadd.xlane.f32.xlu1 %v1202_v44  ;;  %1215 = vpow2.f32 %v681_v38 }
 0x26c   : > { %765 = vadd.xlane.f32.xlu0 %v1204_v16  ;;  %1217 = vpow2.f32 %v679_v52 }
 0x26d   : > { %1219 = vpow2.f32 %v677_v51 }
 0x26e   : > { %v1206_v47 = vpop.eup %1205  ;;  %1221 = vpow2.f32 %v675_v55  ;;  %v806_v55 = vld [vmem:[#allocation2 + $0x18] sm:$0xff] (!%p997_p6) }
 0x26f   : > { %763 = vadd.xlane.f32.xlu1 %v1206_v47  ;;  %v1208_v24 = vpop.eup %1207  ;;  %1223 = vpow2.f32 %v683_v50 }
 0x270   : > { %1225 = vpow2.f32 %v685_v56 }
 0x272   : > { %v1210_v28 = vpop.eup %1209 }
 0x273   : > { %771 = vadd.xlane.f32.xlu1 %v1208_v24  ;;  %773 = vadd.xlane.f32.xlu0 %v1210_v28  ;;  %v1212_v57 = vpop.eup %1211  ;;  %v661_v28 = vld [vmem:[#allocation3 + $0x30] sm:$0xff] }
 0x274   : > { %v1214_v58 = vpop.eup %1213  ;;  %v688_v59 = vmul.f32 %v1212_v57, %v656_v54 }
 0x275   : > { %v1216_v2 = vpop.eup %1215  ;;  %v687_v12 = vmul.f32 %v1214_v58, %v655_v62  ;;  %v807_v58 = vld [vmem:[#allocation2 + $0x20] sm:$0xff] (!%p997_p6) }
 0x276   : > { %v1218_v13 = vpop.eup %1217  ;;  %v692_v11 = vmul.f32 %v1216_v2, %v660_v7 }
 0x277   : > { %v1220_v15 = vpop.eup %1219  ;;  %v691_v27 = vmul.f32 %v1218_v13, %v659_v14 }
 0x278   : > { %v1222_v37 = vpop.eup %1221  ;;  %v690_v60 = vmul.f32 %v1220_v15, %v658_v23  ;;  %v809_v15 = vld [vmem:[#allocation2 + $0x30] sm:$0xff] (!%p997_p6) }
 0x279   : > { %v1224_v44 = vpop.eup %1223  ;;  %v689_v16 = vmul.f32 %v1222_v37, %v657_v61  ;;  %v810_v37 = vld [vmem:[#allocation2 + $0x38] sm:$0xff] (!%p997_p6) }
 0x27a   : > { %v1226_v47 = vpop.eup %1225 }
 0x288   : > { %v574_v49 = vpop.xlane.xlu0 %573 }
 0x289   : > { %v589_v33 = vadd.f32 %v574_v49, %v557_v29  ;;  %v662_v29 = vld [vmem:[#allocation3 + $0x38] sm:$0xff] }
 0x28b   : > { %598 = vst.msk [vmem:[#allocation4] sm:$0xff] %vm597_vm6, %v589_v33  ;;  %v693_v33 = vmul.f32 %v1224_v44, %v661_v28 }
 0x28c   : > { %v578_v4 = vpop.xlane.xlu0 %577 }
 0x28d   : > { %v591_v32 = vadd.f32 %v578_v4, %v559_v35  ;;  %v694_v35 = vmul.f32 %v1226_v47, %v662_v29 }
 0x28f   : > { %600 = vst.msk [vmem:[#allocation4 + $0x10] sm:$0xff] %vm597_vm6, %v591_v32 }
 0x290   : > { %v580_v63 = vpop.xlane.xlu0 %579 }
 0x291   : > { %v592_v1 = vadd.f32 %v580_v63, %v560_v18 }
 0x293   : > { %601 = vst.msk [vmem:[#allocation4 + $0x18] sm:$0xff] %vm597_vm6, %v592_v1 }
 0x294   : > { %v584_v34 = vpop.xlane.xlu0 %583 }
 0x295   : > { %v594_v36 = vadd.f32 %v584_v34, %v562_v20  ;;  %v576_v40 = vpop.xlane.xlu1 %575 }
 0x296   : > { %v590_v41 = vadd.f32 %v576_v40, %v558_v21  ;;  %v845_v54 = vld [vmem:[#allocation4 + $0x10] sm:$0xff] (!%p997_p6) }
 0x297   : > { %603 = vst.msk [vmem:[#allocation4 + $0x28] sm:$0xff] %vm597_vm6, %v594_v36 }
 0x298   : > { %599 = vst.msk [vmem:[#allocation4 + $0x8] sm:$0xff] %vm597_vm6, %v590_v41  ;;  %v588_v26 = vpop.xlane.xlu0 %587 }
 0x299   : > { %v596_v43 = vadd.f32 %v588_v26, %v564_v42  ;;  %v582_v46 = vpop.xlane.xlu1 %581  ;;  %v803_v26 = vld [vmem:[#allocation2] sm:$0xff] (!%p997_p6) }
 0x29a   : > { %v593_v0 = vadd.f32 %v582_v46, %v561_v3 }
 0x29b   : > { %605 = vst.msk [vmem:[#allocation4 + $0x38] sm:$0xff] %vm597_vm6, %v596_v43 }
 0x29c   : > { %602 = vst.msk [vmem:[#allocation4 + $0x20] sm:$0xff] %vm597_vm6, %v593_v0  ;;  %v804_v0 = vld [vmem:[#allocation2 + $0x8] sm:$0xff] (!%p997_p6) }
 0x29d   : > { %v586_v39 = vpop.xlane.xlu1 %585 }
 0x29e   : > { %v595_v31 = vadd.f32 %v586_v39, %v563_v22  ;;  %v843_v39 = vld [vmem:[#allocation4] sm:$0xff] (!%p997_p6) }
 0x29f   : > { %v844_v52 = vld [vmem:[#allocation4 + $0x8] sm:$0xff] (!%p997_p6) }
 0x2a0   : > { %604 = vst.msk [vmem:[#allocation4 + $0x30] sm:$0xff] %vm597_vm6, %v595_v31 }
 0x2a2   : > { %v850_v44 = vld [vmem:[#allocation4 + $0x38] sm:$0xff] (!%p997_p6) }
 0x2a7   : > { %v849_v61 = vld [vmem:[#allocation4 + $0x30] sm:$0xff] (!%p997_p6) }
 0x2f0   : > { %v762_v6 = vpop.xlane.xlu0 %761 }
 0x2f1   : > { %v776_v8 = vadd.f32 %v762_v6, %v688_v59  ;;  %v846_v6 = vld [vmem:[#allocation4 + $0x18] sm:$0xff] (!%p997_p6) }
 0x2f3   : > { %784 = vst.msk [vmem:[#allocation3 + $0x8] sm:$0xff] %vm597_vm6, %v776_v8  ;;  %v808_v8 = vld [vmem:[#allocation2 + $0x28] sm:$0xff] (!%p997_p6) }
 0x2f4   : > { %v760_v5 = vpop.xlane.xlu1 %759 }
 0x2f5   : > { %v775_v17 = vadd.f32 %v760_v5, %v687_v12  ;;  %v770_v19 = vpop.xlane.xlu0 %769 }
 0x2f6   : > { %v780_v25 = vadd.f32 %v770_v19, %v692_v11  ;;  %v847_v11 = vld [vmem:[#allocation4 + $0x20] sm:$0xff] (!%p997_p6) }
 0x2f7   : > { %783 = vst.msk [vmem:[#allocation3] sm:$0xff] %vm597_vm6, %v775_v17 }
 0x2f8   : > { %788 = vst.msk [vmem:[#allocation3 + $0x28] sm:$0xff] %vm597_vm6, %v780_v25  ;;  %v768_v53 = vpop.xlane.xlu1 %767  ;;  %v848_v25 = vld [vmem:[#allocation4 + $0x28] sm:$0xff] (!%p997_p6) }
 0x2f9   : > { %v779_v9 = vadd.f32 %v768_v53, %v691_v27  ;;  %v766_v45 = vpop.xlane.xlu0 %765 }
 0x2fa   : > { %v778_v10 = vadd.f32 %v766_v45, %v690_v60  ;;  %v812_v20 = vld [vmem:[#allocation3 + $0x8] sm:$0xff] (!%p997_p6) }
 0x2fb   : > { %787 = vst.msk [vmem:[#allocation3 + $0x20] sm:$0xff] %vm597_vm6, %v779_v9 }
 0x2fc   : > { %786 = vst.msk [vmem:[#allocation3 + $0x18] sm:$0xff] %vm597_vm6, %v778_v10  ;;  %v764_v24 = vpop.xlane.xlu1 %763 }
 0x2fd   : > { %v777_v49 = vadd.f32 %v764_v24, %v689_v16  ;;  %802 = sbr.rel (%p997_p6) target bundleno = 798 (0x31e), region = 48 }
 0x2fe   : > { %v811_v1 = vld [vmem:[#allocation3] sm:$0xff] (!%p997_p6) }
 0x2ff   : > { %785 = vst.msk [vmem:[#allocation3 + $0x10] sm:$0xff] %vm597_vm6, %v777_v49  ;;  %1227 = vlog2.f32 (!%p997_p6), %v811_v1  ;;  %v816_v40 = vld [vmem:[#allocation3 + $0x28] sm:$0xff] (!%p997_p6) }
 0x300   : > { %v772_v4 = vpop.xlane.xlu1 %771  ;;  %v774_v32 = vpop.xlane.xlu0 %773  ;;  %1229 = vlog2.f32 (!%p997_p6), %v812_v20 }
 0x301   : > { %v781_v18 = vadd.f32 %v772_v4, %v693_v33  ;;  %v782_v63 = vadd.f32 %v774_v32, %v694_v35 }
 0x302   : > { %v815_v36 = vld [vmem:[#allocation3 + $0x20] sm:$0xff] (!%p997_p6) }
 0x303   : > { %789 = vst.msk [vmem:[#allocation3 + $0x30] sm:$0xff] %vm597_vm6, %v781_v18  ;;  %790 = vst.msk [vmem:[#allocation3 + $0x38] sm:$0xff] %vm597_vm6, %v782_v63  ;;  %v814_v34 = vld [vmem:[#allocation3 + $0x18] sm:$0xff] (!%p997_p6) }
 0x306   : > { %v813_v21 = vld [vmem:[#allocation3 + $0x10] sm:$0xff] }
 0x307   : > { %1231 = vlog2.f32 %v813_v21 }
 0x308   : > { %1233 = vlog2.f32 %v814_v34 }
 0x309   : > { %1235 = vlog2.f32 %v815_v36  ;;  %v1228_v3 = vpop.eup %1227 }
 0x30a   : > { %1237 = vlog2.f32 %v816_v40  ;;  %v817_v41 = vld [vmem:[#allocation3 + $0x30] sm:$0xff]  ;;  %v818_v42 = vld [vmem:[#allocation3 + $0x38] sm:$0xff]  ;;  %v1230_v43 = vpop.eup %1229  ;;  %v820_v46 = vmul.f32 0.6931472, %v1228_v3 }
 0x30b   : > { %1239 = vlog2.f32 %v817_v41  ;;  %v822_v31 = vmul.f32 0.6931472, %v1230_v43 }
 0x30c   : > { %1241 = vlog2.f32 %v818_v42  ;;  %v835_v38 = vadd.f32 %v820_v46, %v803_v26 }
 0x30d   : > { %v836_v50 = vadd.f32 %v822_v31, %v804_v0 }
 0x30e   : > { %v851_v62 = vsub.f32 %v835_v38, %v843_v39 }
 0x30f   : > { %v852_v13 = vsub.f32 %v836_v50, %v844_v52 }
 0x310   : > { %859 = vst.msk [vmem:[%s1514_s28] sm:$0xff] %vm597_vm6, %v851_v62 }
 0x311   : > { %v1232_v22 = vpop.eup %1231  ;;  %860 = vst.msk [vmem:[%s1514_s28 + $0x8] sm:$0xff] %vm597_vm6, %v852_v13 }
 0x312   : > { %v1234_v48 = vpop.eup %1233  ;;  %v824_v51 = vmul.f32 0.6931472, %v1232_v22 }
 0x313   : > { %v1236_v57 = vpop.eup %1235  ;;  %v826_v56 = vmul.f32 0.6931472, %v1234_v48 }
 0x314   : > { %v1238_v59 = vpop.eup %1237  ;;  %v837_v2 = vadd.f32 %v824_v51, %v805_v30  ;;  %v828_v7 = vmul.f32 0.6931472, %v1236_v57 }
 0x315   : > { %v1240_v12 = vpop.eup %1239  ;;  %v838_v5 = vadd.f32 %v826_v56, %v806_v55  ;;  %v830_v14 = vmul.f32 0.6931472, %v1238_v59 }
 0x316   : > { %v1242_v17 = vpop.eup %1241  ;;  %v853_v19 = vsub.f32 %v837_v2, %v845_v54  ;;  %v839_v23 = vadd.f32 %v828_v7, %v807_v58  ;;  %v832_v27 = vmul.f32 0.6931472, %v1240_v12 }
 0x317   : > { %v854_v53 = vsub.f32 %v838_v5, %v846_v6  ;;  %v840_v60 = vadd.f32 %v830_v14, %v808_v8  ;;  %v834_v9 = vmul.f32 0.6931472, %v1242_v17 }
 0x318   : > { %861 = vst.msk [vmem:[%s1514_s28 + $0x10] sm:$0xff] %vm597_vm6, %v853_v19  ;;  %v855_v45 = vsub.f32 %v839_v23, %v847_v11  ;;  %v841_v10 = vadd.f32 %v832_v27, %v809_v15 }
 0x319   : > { %862 = vst.msk [vmem:[%s1514_s28 + $0x18] sm:$0xff] %vm597_vm6, %v854_v53  ;;  %v856_v16 = vsub.f32 %v840_v60, %v848_v25  ;;  %v842_v47 = vadd.f32 %v834_v9, %v810_v37 }
 0x31a   : > { %863 = vst.msk [vmem:[%s1514_s28 + $0x20] sm:$0xff] %vm597_vm6, %v855_v45  ;;  %v857_v24 = vsub.f32 %v841_v10, %v849_v61 }
 0x31b   : > { %864 = vst.msk [vmem:[%s1514_s28 + $0x28] sm:$0xff] %vm597_vm6, %v856_v16  ;;  %v858_v28 = vsub.f32 %v842_v47, %v850_v44 }
 0x31c   : > { %865 = vst.msk [vmem:[%s1514_s28 + $0x30] sm:$0xff] %vm597_vm6, %v857_v24 }
 0x31d   : > { %866 = vst.msk [vmem:[%s1514_s28 + $0x38] sm:$0xff] %vm597_vm6, %v858_v28 }
 0x31e PF: > { %s17_s22 = sadd.s32 1, %s1339_s22   ;;  %s1927_s15 = smov %s1315_s16 }
 0x31f   : > { %p14_p7 = scmp.ge.s32.totalorder %s17_s22, 10   ;;  %s1928_s16 = smov %s1319_s17 }
 0x320   : > { %s1929_s17 = smov %s1431_s29  ;;  %s1930_s18 = smov %s1331_s20 }
 0x321   : > { %s1931_s19 = smov %s1335_s21  ;;  %s1932_s20 = smov %s1935_s24 }
 0x322   : > { %s1933_s21 = smov %s1939_s25  ;;  %16 = sbr.rel (!%p14_p7) target bundleno = 5 (0x5), region = 93 }
 0x329   :  { %889 = vsyncpa [#allocation6], 1 }
 0x32a   :  { %891 = vsyncpa [#allocation6 + $0x1], 1 }

</bundles_post_ra>
